<compile_context>
chip_gen: v7x
topology: tpu7x:2x2x1
jax: 0.10.0
libtpu: 0.0.40
codegen_flags: <defaults>
</compile_context>

<pallas_src>
import functools

import jax
import jax.numpy as jnp
from jax.experimental import pallas as pl
from jax.experimental.pallas import tpu as pltpu

_NEG_INF = -1e30
_LANES = 128
_SPLIT_MIN_BATCH = 256  # once batch >= this, force >= 2 grid steps (v7x: 2 TensorCores)


def _round_up(n: int, m: int) -> int:
    return ((n + m - 1) // m) * m


def policy_net_kernel(x_ref, w1_ref, b1_ref, w2_ref, b2_ref, w3_ref, b3_ref, out_ref):
    """One (TB, S) activation tile -> one (TB, A_pad) softmax tile."""
    x = x_ref[...].astype(jnp.bfloat16)

    # Layer 1: Linear + ReLU (bf16 MXU matmul, f32 accumulate / elementwise).
    # NOTE: K = state_size (e.g. 16) is intentionally NOT padded to 128 — not MXU-bound.
    h1 = jnp.dot(x, w1_ref[...], preferred_element_type=jnp.float32) + b1_ref[...]
    h1 = jnp.maximum(h1, 0.0)

    # Layer 2: Linear + ReLU
    h2 = jnp.dot(h1.astype(jnp.bfloat16), w2_ref[...],
                 preferred_element_type=jnp.float32) + b2_ref[...]
    h2 = jnp.maximum(h2, 0.0)

    # Output layer: Linear (lane-padded to 128; pad lanes carry -1e30 bias).
    logits = jnp.dot(h2.astype(jnp.bfloat16), w3_ref[...],
                     preferred_element_type=jnp.float32) + b3_ref[...]

    # Numerically stable softmax over the lane-dense tile. exp(-1e30 - m) underflows to
    # exactly 0, so padded lanes contribute nothing to the denominator.
    m = jnp.max(logits, axis=-1, keepdims=True)
    e = jnp.exp(logits - m)
    denom = jnp.sum(e, axis=-1, keepdims=True)
    # Exact divide (perf review): approx vrcp gave ~1e-3 row-sum error; kernel is
    # overhead/DMA-bound so the exact divide costs nothing measurable.
    out_ref[...] = (e / denom).astype(out_ref.dtype)


def pack_params(params):
    """Pad the output layer to a lane-dense 128-multiple width; cast weights to bf16."""
    w1, b1, w2, b2, w3, b3 = params
    action_size = w3.shape[1]
    a_pad = _round_up(action_size, _LANES)
    w3p = jnp.zeros((w3.shape[0], a_pad), jnp.float32).at[:, :action_size].set(w3)
    b3p = jnp.full((1, a_pad), _NEG_INF, jnp.float32).at[:, :action_size].set(b3)
    packed = (
        w1.astype(jnp.bfloat16), b1.astype(jnp.float32),
        w2.astype(jnp.bfloat16), b2.astype(jnp.float32),
        w3p.astype(jnp.bfloat16), b3p.astype(jnp.float32),
    )
    return packed, action_size


def _pick_batch_tile(batch: int, tile_batch: int) -> int:
    """Choose the batch tile: big (amortize step overhead), >=2 grid steps for large
    batches (v7x 2 TCs), and avoid padding when batch already divides the tile."""
    tile_batch = max(8, _round_up(tile_batch, 8))
    b8 = _round_up(batch, 8)
    tb = min(tile_batch, b8)
    if batch >= _SPLIT_MIN_BATCH and (b8 // tb) < 2:
        tb = _round_up(pl.cdiv(b8, 2), 8)  # split a single giant tile across both cores
    return tb


@functools.partial(jax.jit,
                   static_argnames=("action_size", "tile_batch", "out_dtype",
                                    "use_core_parallel"))
def policy_network_forward(x, packed_params, *, action_size, tile_batch=512,
                           out_dtype=jnp.float32, use_core_parallel=False):
    """Batched forward: softmax action probabilities, shape (batch, action_size)."""
    w1, b1, w2, b2, w3p, b3p = packed_params
    batch, state_size = x.shape
    h1_dim, h2_dim = w1.shape[1], w2.shape[1]
    a_pad = w3p.shape[1]

    tb = _pick_batch_tile(batch, tile_batch)
    b_pad = _round_up(batch, tb)
    if b_pad != batch:  # only pad ragged batches; common RL batch sizes skip this HBM pass
        x = jnp.pad(x, ((0, b_pad - batch), (0, 0)))

    # --- VMEM budget (documented/asserted per review; v7x physical VMEM is 64 MiB) ------
    out_itemsize = jnp.dtype(out_dtype).itemsize
    weight_bytes = sum(int(p.size) * p.dtype.itemsize for p in packed_params)
    vmem_needed = (weight_bytes
                   + 2 * tb * state_size * 4        # double-buffered input tiles (f32)
                   + 2 * tb * a_pad * out_itemsize  # double-buffered output tiles
                   + 6 * tb * max(h1_dim, h2_dim, a_pad) * 4)  # f32 intermediates + slack
    assert vmem_needed <= 48 * 1024 * 1024, (
        f"per-step VMEM estimate {vmem_needed} B too close to v7x's 64 MiB; lower tile_batch")
    # v5e's default scoped-VMEM limit is only 16 MiB; raise it explicitly with headroom.
    vmem_limit = int(min(max(2 * vmem_needed, 32 * 1024 * 1024), 64 * 1024 * 1024))

    # --- advisory cost estimate so XLA schedules surrounding RL-loop ops sensibly --------
    flops = 2 * b_pad * (state_size * h1_dim + h1_dim * h2_dim + h2_dim * a_pad)
    bytes_accessed = (b_pad * state_size * 4 + b_pad * a_pad * out_itemsize + weight_bytes)
    cost = pl.CostEstimate(flops=flops, transcendentals=b_pad * a_pad,
                           bytes_accessed=bytes_accessed)

    # "parallel" is portable; CORE_PARALLEL actually changes codegen for v7x's 2 TCs.
    batch_sem = pltpu.CORE_PARALLEL if use_core_parallel else "parallel"

    # Constant index_map => operand stays VMEM-resident across the whole batch grid.
    resident = lambda a: pl.BlockSpec(a.shape, lambda i: (0,) * a.ndim)

    out = pl.pallas_call(
        policy_net_kernel,
        out_shape=jax.ShapeDtypeStruct((b_pad, a_pad), out_dtype),
        grid=(b_pad // tb,),
        in_specs=[
            pl.BlockSpec((tb, state_size), lambda i: (i, 0)),  # per-step activation tile
            resident(w1), resident(b1),
            resident(w2), resident(b2),
            resident(w3p), resident(b3p),
        ],
        out_specs=pl.BlockSpec((tb, a_pad), lambda i: (i, 0)),
        compiler_params=pltpu.CompilerParams(
            dimension_semantics=(batch_sem,),
            vmem_limit_bytes=vmem_limit,
        ),
        cost_estimate=cost,
    )(x, w1, b1, w2, b2, w3p, b3p)

    return out[:batch, :action_size]


def init_params(key, state_size, hidden_sizes, action_size):
    """Deterministic PyTorch-style (Kaiming-uniform-ish) init; weights stored (in, out)."""
    sizes = [state_size] + list(hidden_sizes) + [action_size]
    params = []
    for i in range(len(sizes) - 1):
        fan_in, fan_out = sizes[i], sizes[i + 1]
        key, kw, kb = jax.random.split(key, 3)
        bound = 1.0 / jnp.sqrt(fan_in)
        w = jax.random.uniform(kw, (fan_in, fan_out), jnp.float32, -bound, bound)
        b = jax.random.uniform(kb, (1, fan_out), jnp.float32, -bound, bound)
        params.extend([w, b])
    return tuple(params)


def reference_forward(x, params):
    """Pure-JAX f32 reference for correctness check."""
    w1, b1, w2, b2, w3, b3 = params
    h1 = jnp.maximum(x @ w1 + b1, 0.0)
    h2 = jnp.maximum(h1 @ w2 + b2, 0.0)
    logits = h2 @ w3 + b3
    return jax.nn.softmax(logits, axis=-1)


if __name__ == "__main__":
    key = jax.random.PRNGKey(0)
    state_size, action_size = 16, 8
    hidden_sizes = [128, 128]  # module default

    kx1, kx2, kp = jax.random.split(key, 3)
    params = init_params(kp, state_size, hidden_sizes, action_size)
    packed, a = pack_params(params)

    # Case 1: batch=256 -> forced >=2 grid steps (two 128-row tiles; exercises megacore split).
    x1 = jax.random.normal(kx1, (256, state_size), jnp.float32)
    out1 = jax.block_until_ready(policy_network_forward(x1, packed, action_size=a))
    ref1 = reference_forward(x1, params)
    assert out1.shape == (256, action_size) and out1.dtype == jnp.float32
    # bf16 matmul inputs => loosened tolerance vs the f32 reference.
    assert jnp.allclose(out1, ref1, atol=2e-2), "mismatch vs reference (batch=256)"
    # Exact softmax divide => rows sum to 1 to f32 rounding.
    assert jnp.allclose(jnp.sum(out1, axis=-1), jnp.ones((256,)), atol=1e-4)

    # Case 2: tiny ragged batch (5 rows -> one padded 8-row tile).
    x2 = jax.random.normal(kx2, (5, state_size), jnp.float32)
    out2 = jax.block_until_ready(policy_network_forward(x2, packed, action_size=a))
    ref2 = reference_forward(x2, params)
    assert out2.shape == (5, action_size)
    assert jnp.allclose(out2, ref2, atol=2e-2), "mismatch vs reference (batch=5)"
    assert jnp.allclose(jnp.sum(out2, axis=-1), jnp.ones((5,)), atol=1e-4)

    # Case 3: bf16 output writeback (halves the dominant HBM write; looser tolerances).
    out3 = jax.block_until_ready(
        policy_network_forward(x1, packed, action_size=a, out_dtype=jnp.bfloat16))
    assert out3.shape == (256, action_size) and out3.dtype == jnp.bfloat16
    assert jnp.allclose(out3.astype(jnp.float32), ref1, atol=3e-2)
    assert jnp.allclose(jnp.sum(out3.astype(jnp.float32), axis=-1),
                        jnp.ones((256,)), atol=2e-2)

    # TODO(synk): Categorical action sampling (torch.distributions) lives outside forward();
    # fusing Gumbel-max sampling into the kernel epilogue would shrink output to (B,1) int32.
    print("KERNEL_OK")
</pallas_src>

<mosaic_0001>
module attributes {stable_mosaic.version = 11 : i64} {
  func.func @policy_net_kernel(%arg0: i32, %arg1: memref<128x16xf32, #tpu.memory_space<vmem>>, %arg2: memref<16x128xbf16, #tpu.memory_space<vmem>>, %arg3: memref<1x128xf32, #tpu.memory_space<vmem>>, %arg4: memref<128x128xbf16, #tpu.memory_space<vmem>>, %arg5: memref<1x128xf32, #tpu.memory_space<vmem>>, %arg6: memref<128x128xbf16, #tpu.memory_space<vmem>>, %arg7: memref<1x128xf32, #tpu.memory_space<vmem>>, %arg8: memref<128x128xf32, #tpu.memory_space<vmem>>) attributes {dimension_semantics = [#tpu.dimension_semantics<parallel>], iteration_bounds = array<i64: 2>, scalar_prefetch = 0 : i64, scratch_operands = 0 : i64, tpu.core_type = #tpu.core_type<tc>, window_params = [{transform_indices = @transform_0, window_bounds = array<i64: 128, 16>}, {pipeline_mode = #tpu.pipeline_mode<synchronous>, transform_indices = @transform_1, window_bounds = array<i64: 16, 128>}, {pipeline_mode = #tpu.pipeline_mode<synchronous>, transform_indices = @transform_2, window_bounds = array<i64: 1, 128>}, {pipeline_mode = #tpu.pipeline_mode<synchronous>, transform_indices = @transform_3, window_bounds = array<i64: 128, 128>}, {pipeline_mode = #tpu.pipeline_mode<synchronous>, transform_indices = @transform_4, window_bounds = array<i64: 1, 128>}, {pipeline_mode = #tpu.pipeline_mode<synchronous>, transform_indices = @transform_5, window_bounds = array<i64: 128, 128>}, {pipeline_mode = #tpu.pipeline_mode<synchronous>, transform_indices = @transform_6, window_bounds = array<i64: 1, 128>}, {transform_indices = @transform_7, window_bounds = array<i64: 128, 128>}]} {
    %c0 = arith.constant 0 : index
    %c0_0 = arith.constant 0 : index
    %0 = vector.load %arg1[%c0, %c0_0] : memref<128x16xf32, #tpu.memory_space<vmem>>, vector<128x16xf32>
    %1 = arith.truncf %0 : vector<128x16xf32> to vector<128x16xbf16>
    %c0_1 = arith.constant 0 : index
    %c0_2 = arith.constant 0 : index
    %2 = vector.load %arg2[%c0_1, %c0_2] : memref<16x128xbf16, #tpu.memory_space<vmem>>, vector<16x128xbf16>
    %cst = arith.constant dense<0.000000e+00> : vector<128x128xf32>
    %3 = tpu.matmul %1, %2, %cst {dimension_numbers = #tpu.dot_dimension_numbers<[1], [0], [0], [1], [0, 0, 1, 1], [], []>} : vector<128x16xbf16>, vector<16x128xbf16>, vector<128x128xf32> -> vector<128x128xf32>
    %c0_3 = arith.constant 0 : index
    %c0_4 = arith.constant 0 : index
    %4 = vector.load %arg3[%c0_3, %c0_4] : memref<1x128xf32, #tpu.memory_space<vmem>>, vector<1x128xf32>
    %5 = vector.broadcast %4 : vector<1x128xf32> to vector<128x128xf32>
    %6 = arith.addf %3, %5 : vector<128x128xf32>
    %cst_5 = arith.constant 0.000000e+00 : f32
    %7 = vector.broadcast %cst_5 : f32 to vector<128x128xf32>
    %8 = arith.maximumf %6, %7 : vector<128x128xf32>
    %9 = arith.truncf %8 : vector<128x128xf32> to vector<128x128xbf16>
    %c0_6 = arith.constant 0 : index
    %c0_7 = arith.constant 0 : index
    %10 = vector.load %arg4[%c0_6, %c0_7] : memref<128x128xbf16, #tpu.memory_space<vmem>>, vector<128x128xbf16>
    %cst_8 = arith.constant dense<0.000000e+00> : vector<128x128xf32>
    %11 = tpu.matmul %9, %10, %cst_8 {dimension_numbers = #tpu.dot_dimension_numbers<[1], [0], [0], [1], [0, 0, 1, 1], [], []>} : vector<128x128xbf16>, vector<128x128xbf16>, vector<128x128xf32> -> vector<128x128xf32>
    %c0_9 = arith.constant 0 : index
    %c0_10 = arith.constant 0 : index
    %12 = vector.load %arg5[%c0_9, %c0_10] : memref<1x128xf32, #tpu.memory_space<vmem>>, vector<1x128xf32>
    %13 = vector.broadcast %12 : vector<1x128xf32> to vector<128x128xf32>
    %14 = arith.addf %11, %13 : vector<128x128xf32>
    %cst_11 = arith.constant 0.000000e+00 : f32
    %15 = vector.broadcast %cst_11 : f32 to vector<128x128xf32>
    %16 = arith.maximumf %14, %15 : vector<128x128xf32>
    %17 = arith.truncf %16 : vector<128x128xf32> to vector<128x128xbf16>
    %c0_12 = arith.constant 0 : index
    %c0_13 = arith.constant 0 : index
    %18 = vector.load %arg6[%c0_12, %c0_13] : memref<128x128xbf16, #tpu.memory_space<vmem>>, vector<128x128xbf16>
    %cst_14 = arith.constant dense<0.000000e+00> : vector<128x128xf32>
    %19 = tpu.matmul %17, %18, %cst_14 {dimension_numbers = #tpu.dot_dimension_numbers<[1], [0], [0], [1], [0, 0, 1, 1], [], []>} : vector<128x128xbf16>, vector<128x128xbf16>, vector<128x128xf32> -> vector<128x128xf32>
    %c0_15 = arith.constant 0 : index
    %c0_16 = arith.constant 0 : index
    %20 = vector.load %arg7[%c0_15, %c0_16] : memref<1x128xf32, #tpu.memory_space<vmem>>, vector<1x128xf32>
    %21 = vector.broadcast %20 : vector<1x128xf32> to vector<128x128xf32>
    %22 = arith.addf %19, %21 : vector<128x128xf32>
    %cst_17 = arith.constant dense<0xFF800000> : vector<128xf32>
    %23 = vector.multi_reduction <maximumf>, %22, %cst_17 [1] : vector<128x128xf32> to vector<128xf32>
    %24 = vector.shape_cast %23 : vector<128xf32> to vector<128x1xf32>
    %25 = vector.broadcast %24 : vector<128x1xf32> to vector<128x128xf32>
    %26 = arith.subf %22, %25 : vector<128x128xf32>
    %27 = math.exp %26 : vector<128x128xf32>
    %cst_18 = arith.constant dense<0.000000e+00> : vector<128xf32>
    %28 = vector.multi_reduction <add>, %27, %cst_18 [1] : vector<128x128xf32> to vector<128xf32>
    %29 = vector.shape_cast %28 : vector<128xf32> to vector<128x1xf32>
    %30 = vector.broadcast %29 : vector<128x1xf32> to vector<128x128xf32>
    %31 = arith.divf %27, %30 : vector<128x128xf32>
    %c0_19 = arith.constant 0 : index
    %c0_20 = arith.constant 0 : index
    %32 = vector.load %arg8[%c0_19, %c0_20] : memref<128x128xf32, #tpu.memory_space<vmem>>, vector<128x128xf32>
    tpu.vector_store %arg8[%c0_19, %c0_20], %31 {strides = array<i32>} : memref<128x128xf32, #tpu.memory_space<vmem>>, vector<128x128xf32>,
    return
  }
  func.func @transform_0(%arg0: i32) -> (i32, i32) {
    %c0_i32 = arith.constant 0 : i32
    %c0_i32_0 = arith.constant 0 : i32
    return %arg0, %c0_i32 : i32, i32
  }
  func.func @transform_1(%arg0: i32) -> (i32, i32) {
    %c0_i32 = arith.constant 0 : i32
    %c0_i32_0 = arith.constant 0 : i32
    %c0_i32_1 = arith.constant 0 : i32
    return %c0_i32, %c0_i32_0 : i32, i32
  }
  func.func @transform_2(%arg0: i32) -> (i32, i32) {
    %c0_i32 = arith.constant 0 : i32
    %c0_i32_0 = arith.constant 0 : i32
    %c0_i32_1 = arith.constant 0 : i32
    return %c0_i32, %c0_i32_0 : i32, i32
  }
  func.func @transform_3(%arg0: i32) -> (i32, i32) {
    %c0_i32 = arith.constant 0 : i32
    %c0_i32_0 = arith.constant 0 : i32
    %c0_i32_1 = arith.constant 0 : i32
    return %c0_i32, %c0_i32_0 : i32, i32
  }
  func.func @transform_4(%arg0: i32) -> (i32, i32) {
    %c0_i32 = arith.constant 0 : i32
    %c0_i32_0 = arith.constant 0 : i32
    %c0_i32_1 = arith.constant 0 : i32
    return %c0_i32, %c0_i32_0 : i32, i32
  }
  func.func @transform_5(%arg0: i32) -> (i32, i32) {
    %c0_i32 = arith.constant 0 : i32
    %c0_i32_0 = arith.constant 0 : i32
    %c0_i32_1 = arith.constant 0 : i32
    return %c0_i32, %c0_i32_0 : i32, i32
  }
  func.func @transform_6(%arg0: i32) -> (i32, i32) {
    %c0_i32 = arith.constant 0 : i32
    %c0_i32_0 = arith.constant 0 : i32
    %c0_i32_1 = arith.constant 0 : i32
    return %c0_i32, %c0_i32_0 : i32, i32
  }
  func.func @transform_7(%arg0: i32) -> (i32, i32) {
    %c0_i32 = arith.constant 0 : i32
    %c0_i32_0 = arith.constant 0 : i32
    return %arg0, %c0_i32 : i32, i32
  }
}

</mosaic_0001>

<bundles_post_ra>
// kernel: policy_network_forward.1
= control target key start
LH: loop header
LB: loop body
LE: loop exit
PB: predicated region body
PF: predicated region fallthrough
CT: control target
= control target key end

     0   :  { %s1343_s24 = smov 0   ;;  %s1567_s0 = inlined_call_operand.vmem [shape: f32[256,16], index: 0, kind: input, shape index: {}]   ;;  %s1568_s1 = inlined_call_operand.vmem [shape: bf16[16,128], index: 1, kind: input, shape index: {}]   ;;  %s1569_s2 = inlined_call_operand.vmem [shape: f32[1,128], index: 2, kind: input, shape index: {}]   ;;  %s1570_s3 = inlined_call_operand.vmem [shape: bf16[128,128], index: 3, kind: input, shape index: {}]   ;;  %s1571_s4 = inlined_call_operand.vmem [shape: f32[1,128], index: 4, kind: input, shape index: {}]   ;;  %s1572_s5 = inlined_call_operand.vmem [shape: bf16[128,128], index: 5, kind: input, shape index: {}]   ;;  %s1573_s6 = inlined_call_operand.vmem [shape: f32[1,128], index: 6, kind: input, shape index: {}]   ;;  %s1574_s7 = inlined_call_operand.vmem [shape: f32[256,128], index: 7, kind: output, shape index: {}]  }
   0x1 LB: > { %s1044_s25 = sadd.s32 4294967295, %s1301_s24   ;;  %p1048_p0 = scmp.ge.s32.totalorder %s1301_s24, 1  ;;  %s1301_s24 = sphi %s1343_s24, %s17_s24  }
   0x2   : > { %p238_p1 = scmp.lt.s32.totalorder %s1301_s24, 3 }
   0x4   : > { %p239_p2 = pnand %p1048_p0, %p238_p1 }
   0x5   : > { %v1214_v0 = vld [vmem:[%s1568_s1] sm:$0xff] (!%p239_p2)   ;;  %s1049_s28 = sshll.u32 (!%p239_p2), %s1044_s25, 4  ;;  %v1216_v2 = vld [vmem:[%s1570_s3 + $0x8] sm:$0xff] (!%p239_p2)   ;;  %v1217_v3 = vld [vmem:[%s1570_s3 + $0x10] sm:$0xff] (!%p239_p2)   ;;  %vm322_vm0 = vcmask (!%p239_p2), 130048  }
   0x6   : > { %242 = sbr.rel (%p239_p2) target bundleno = 1023 (0x3ff), region = 48  ;;  %p271_p3 = scmp.lt.s32.totalorder (!%p239_p2), %s1049_s28, 31  ;;  %1124 = vmatprep.subr.bf16.mxu0 (!%p239_p2), %v1214_v0  ;;  %v1215_v1 = vld [vmem:[%s1570_s3] sm:$0xff] (!%p239_p2)   ;;  %v1218_v13 = vld [vmem:[%s1570_s3 + $0x18] sm:$0xff] (!%p239_p2)   ;;  %v1220_v21 = vld [vmem:[%s1570_s3 + $0x28] sm:$0xff] (!%p239_p2)  }
   0x7   : > { %1125 = vmatpush3.bf16.msra.mxu0 (!%p239_p2), %v1214_v0  ;;  %1142 = vmatprep.subr.bf16.mxu1 (!%p239_p2), %v1215_v1  ;;  %v1219_v18 = vld [vmem:[%s1570_s3 + $0x20] sm:$0xff] (!%p239_p2)   ;;  %v1221_v31 = vld [vmem:[%s1570_s3 + $0x30] sm:$0xff] (!%p239_p2)   ;;  %v1222_v32 = vld [vmem:[%s1570_s3 + $0x38] sm:$0xff] (!%p239_p2)  }
   0x8   : > { %1143 = vmatpush3.bf16.msra.mxu1 (!%p239_p2), %v1215_v1  ;;  %v1223_v33 = vld [vmem:[%s1572_s5] sm:$0xff] (!%p239_p2)   ;;  %v1224_v34 = vld [vmem:[%s1572_s5 + $0x8] sm:$0xff] (!%p239_p2)   ;;  %v1225_v35 = vld [vmem:[%s1572_s5 + $0x10] sm:$0xff] (!%p239_p2)  }
   0x9   : > { %1144 = vmatprep.subr.bf16.mxu1 (!%p239_p2), %v1216_v2  ;;  %1174 = vmatprep.subr.bf16.mxu0 (!%p239_p2), %v1223_v33  ;;  %v1226_v36 = vld [vmem:[%s1572_s5 + $0x18] sm:$0xff] (!%p239_p2)   ;;  %v1227_v37 = vld [vmem:[%s1572_s5 + $0x20] sm:$0xff] (!%p239_p2)   ;;  %v1228_v38 = vld [vmem:[%s1572_s5 + $0x28] sm:$0xff] (!%p239_p2)  }
   0xa   : > { %v1053_v39 = vld [vmem:[%s1569_s2] ss:$0 sm:$0xff] (!%p239_p2) }
   0xc   : > { %1145 = vmatpush3.bf16.msra.mxu1 (!%p239_p2), %v1216_v2 }
   0xd   : > { %s1576_s28 = smov (!%p271_p3, %s1049_s28), 31  ;;  %1146 = vmatprep.subr.bf16.mxu1 %v1217_v3 }
   0xe   : > { %s1050_s10 = sshll.u32 %s1576_s28, 3 }
   0xf   : > { %s1368_s13 = scalar_lea.vmem %s1567_s0, %s1050_s10  ;;  %s1530_s9 = scalar_lea.vmem %s1574_s7, %s1050_s10 }
  0x10   : > { %v283_v4 = vld [vmem:[%s1368_s13] sm:$0xff]  ;;  %v284_v5 = vld [vmem:[%s1368_s13 + $0x8] sm:$0xff]  ;;  %v285_v6 = vld [vmem:[%s1368_s13 + $0x10] sm:$0xff]  ;;  %1147 = vmatpush3.bf16.msra.mxu1 %v1217_v3 }
  0x11   : > { %v299_v7 = vpack.c.bf16 %v284_v5, %v283_v4  ;;  %v286_v8 = vld [vmem:[%s1368_s13 + $0x18] sm:$0xff]  ;;  %v287_v9 = vld [vmem:[%s1368_s13 + $0x20] sm:$0xff]  ;;  %v288_v10 = vld [vmem:[%s1368_s13 + $0x28] sm:$0xff]  ;;  %1148 = vmatprep.subr.bf16.mxu1 %v1218_v13 }
  0x12   : > { %v300_v11 = vpack.c.bf16 %v286_v8, %v285_v6  ;;  %v301_v12 = vpack.c.bf16 %v288_v10, %v287_v9  ;;  %v289_v14 = vld [vmem:[%s1368_s13 + $0x30] sm:$0xff]  ;;  %v290_v15 = vld [vmem:[%s1368_s13 + $0x38] sm:$0xff]  ;;  %v291_v16 = vld [vmem:[%s1368_s13 + $0x40] sm:$0xff] }
  0x13   : > { %1126 = vmatprep.mubr.msk.bf16.mxu0 %vm322_vm0, %v299_v7  ;;  %v292_v17 = vld [vmem:[%s1368_s13 + $0x48] sm:$0xff]  ;;  %v302_v19 = vpack.c.bf16 %v290_v15, %v289_v14  ;;  %v293_v22 = vld [vmem:[%s1368_s13 + $0x50] sm:$0xff]  ;;  %v294_v23 = vld [vmem:[%s1368_s13 + $0x58] sm:$0xff] }
  0x14   : > { %1127 = vmatmul.mubr.msk.bf16.vlgmr.msra.gmra.mrb[0].mxu0 %vm322_vm0, %v300_v11  ;;  %v303_v20 = vpack.c.bf16 %v292_v17, %v291_v16  ;;  %1149 = vmatpush3.bf16.msra.mxu1 %v1218_v13  ;;  %v295_v24 = vld [vmem:[%s1368_s13 + $0x60] sm:$0xff]  ;;  %v296_v25 = vld [vmem:[%s1368_s13 + $0x68] sm:$0xff]  ;;  %v304_v26 = vpack.c.bf16 %v294_v23, %v293_v22  ;;  %v297_v28 = vld [vmem:[%s1368_s13 + $0x70] sm:$0xff] }
  0x15   : > { %1130 = vmatprep.mubr.msk.bf16.mxu0 %vm322_vm0, %v301_v12  ;;  %1150 = vmatprep.subr.bf16.mxu1 %v1219_v18  ;;  %v305_v27 = vpack.c.bf16 %v296_v25, %v295_v24  ;;  %v298_v29 = vld [vmem:[%s1368_s13 + $0x78] sm:$0xff] }
  0x16   : > { %v306_v30 = vpack.c.bf16 %v298_v29, %v297_v28  ;;  %1175 = vmatpush3.bf16.msra.mxu0 %v1223_v33  ;;  %v1230_v33 = vld [vmem:[%s1572_s5 + $0x38] sm:$0xff]  }
  0x17   : > { %1176 = vmatprep.subr.bf16.mxu0 %v1224_v34 }
  0x18   : > { %1151 = vmatpush3.bf16.msra.mxu1 %v1219_v18 }
  0x19   : > { %1152 = vmatprep.subr.bf16.mxu1 %v1220_v21 }
  0x1a   : > { %1177 = vmatpush3.bf16.msra.mxu0 %v1224_v34  ;;  %v1063_v34 = vld [vmem:[%s1571_s4] ss:$0 sm:$0xff] }
  0x1b   : > { %1178 = vmatprep.subr.bf16.mxu0 %v1225_v35 }
  0x1c   : > { %1131 = vmatmul.mubr.msk.bf16.gmra.mrb[4].mxu0 %vm322_vm0, %v302_v19  ;;  %1153 = vmatpush3.bf16.msra.mxu1 %v1220_v21 }
  0x1d   : > { %1134 = vmatprep.mubr.msk.bf16.mxu0 %vm322_vm0, %v303_v20  ;;  %1154 = vmatprep.subr.bf16.mxu1 %v1221_v31 }
  0x1e   : > { %1179 = vmatpush3.bf16.msra.mxu0 %v1225_v35 }
  0x1f   : > { %1180 = vmatprep.subr.bf16.mxu0 %v1226_v36 }
  0x20   : > { %1155 = vmatpush3.bf16.msra.mxu1 %v1221_v31 }
  0x21   : > { %1156 = vmatprep.subr.bf16.mxu1 %v1222_v32 }
  0x22   : > { %1181 = vmatpush3.bf16.msra.mxu0 %v1226_v36 }
  0x23   : > { %1182 = vmatprep.subr.bf16.mxu0 %v1227_v37 }
  0x24   : > { %1135 = vmatmul.mubr.msk.bf16.gmra.mrb[8].mxu0 %vm322_vm0, %v304_v26  ;;  %1157 = vmatpush3.bf16.msra.mxu1 %v1222_v32  ;;  %v1229_v32 = vld [vmem:[%s1572_s5 + $0x30] sm:$0xff]  }
  0x25   : > { %1138 = vmatprep.mubr.msk.bf16.mxu0 %vm322_vm0, %v305_v27 }
  0x26   : > { %1183 = vmatpush3.bf16.msra.mxu0 %v1227_v37 }
  0x27   : > { %1184 = vmatprep.subr.bf16.mxu0 %v1228_v38 }
  0x2a   : > { %1185 = vmatpush3.bf16.msra.mxu0 %v1228_v38 }
  0x2b   : > { %1186 = vmatprep.subr.bf16.mxu0 %v1229_v32 }
  0x2c   : > { %1139 = vmatmul.mubr.msk.bf16.gmra.mrb[12].mxu0 %vm322_vm0, %v306_v30 }
  0x2e   : > { %1187 = vmatpush3.bf16.msra.mxu0 %v1229_v32 }
  0x2f   : > { %1188 = vmatprep.subr.bf16.mxu0 %v1230_v33 }
  0x32   : > { %1189 = vmatpush3.bf16.msra.mxu0 %v1230_v33 }
  0xe7   : > { %v1128_v40 = vpop.f32.mrb[0].mxu0 }
  0xe8   : > { %v390_v41 = vadd.f32 %v1128_v40, %v1053_v39  ;;  %v381_v42 = vpop.f32.mrb[1].mxu0 }
  0xe9   : > { %v382_v43 = vadd.f32 %v1053_v39, %v381_v42  ;;  %v1129_v44 = vpop.f32.mrb[2].mxu0 }
  0xea   : > { %v393_v45 = vadd.f32 %v1129_v44, %v1053_v39  ;;  %v384_v46 = vpop.f32.mrb[3].mxu0  ;;  %v446_v48 = vmax.f32 %v390_v41, 0.0 }
  0xeb   : > { %v385_v47 = vadd.f32 %v1053_v39, %v384_v46  ;;  %v444_v50 = vmax.f32 %v382_v43, 0.0 }
  0xec   : > { %v447_v49 = vmax.f32 %v393_v45, 0.0 }
  0xed   : > { %v445_v51 = vmax.f32 %v385_v47, 0.0 }
  0xee   : > { %v461_v52 = vpack.c.bf16 %v447_v49, %v446_v48 }
  0xef   : > { %v1132_v53 = vpop.f32.mrb[4].mxu0  ;;  %v460_v54 = vpack.c.bf16 %v445_v51, %v444_v50 }
  0xf0   : > { %v406_v55 = vadd.f32 %v1132_v53, %v1053_v39  ;;  %v397_v56 = vpop.f32.mrb[5].mxu0 }
  0xf1   : > { %v398_v57 = vadd.f32 %v1053_v39, %v397_v56  ;;  %v1133_v58 = vpop.f32.mrb[6].mxu0  ;;  %1158 = vmatprep.mubr.bf16.mxu1 %v460_v54 }
  0xf2   : > { %v450_v59 = vmax.f32 %v406_v55, 0.0  ;;  %v409_v60 = vadd.f32 %v1133_v58, %v1053_v39  ;;  %v400_v61 = vpop.f32.mrb[7].mxu0  ;;  %1159 = vmatmul.mubr.bf16.vlgmr.msra.gmra.mrb[0].mxu1 %v461_v52 }
  0xf3   : > { %v401_v62 = vadd.f32 %v1053_v39, %v400_v61  ;;  %v448_v0 = vmax.f32 %v398_v57, 0.0 }
  0xf4   : > { %v451_v63 = vmax.f32 %v409_v60, 0.0 }
  0xf5   : > { %v449_v1 = vmax.f32 %v401_v62, 0.0 }
  0xf6   : > { %v463_v2 = vpack.c.bf16 %v451_v63, %v450_v59 }
  0xf7   : > { %v462_v3 = vpack.c.bf16 %v449_v1, %v448_v0  ;;  %v1136_v4 = vpop.f32.mrb[8].mxu0 }
  0xf8   : > { %v422_v5 = vadd.f32 %v1136_v4, %v1053_v39  ;;  %v413_v6 = vpop.f32.mrb[9].mxu0 }
  0xf9   : > { %v414_v7 = vadd.f32 %v1053_v39, %v413_v6  ;;  %v1137_v8 = vpop.f32.mrb[10].mxu0  ;;  %1162 = vmatprep.mubr.bf16.mxu1 %v462_v3 }
  0xfa   : > { %v454_v9 = vmax.f32 %v422_v5, 0.0  ;;  %v425_v10 = vadd.f32 %v1137_v8, %v1053_v39  ;;  %v416_v11 = vpop.f32.mrb[11].mxu0  ;;  %1163 = vmatmul.mubr.bf16.gmra.mrb[4].mxu1 %v463_v2 }
  0xfb   : > { %v417_v12 = vadd.f32 %v1053_v39, %v416_v11  ;;  %v452_v14 = vmax.f32 %v414_v7, 0.0 }
  0xfc   : > { %v455_v13 = vmax.f32 %v425_v10, 0.0 }
  0xfd   : > { %v453_v15 = vmax.f32 %v417_v12, 0.0 }
  0xfe   : > { %v465_v16 = vpack.c.bf16 %v455_v13, %v454_v9 }
  0xff   : > { %v464_v17 = vpack.c.bf16 %v453_v15, %v452_v14  ;;  %v1140_v18 = vpop.f32.mrb[12].mxu0 }
 0x100   : > { %v438_v19 = vadd.f32 %v1140_v18, %v1053_v39  ;;  %v429_v20 = vpop.f32.mrb[13].mxu0 }
 0x101   : > { %v430_v21 = vadd.f32 %v1053_v39, %v429_v20  ;;  %v1141_v22 = vpop.f32.mrb[14].mxu0  ;;  %1166 = vmatprep.mubr.bf16.mxu1 %v464_v17 }
 0x102   : > { %v458_v23 = vmax.f32 %v438_v19, 0.0  ;;  %v441_v24 = vadd.f32 %v1141_v22, %v1053_v39  ;;  %v432_v25 = vpop.f32.mrb[15].mxu0  ;;  %1167 = vmatmul.mubr.bf16.gmra.mrb[8].mxu1 %v465_v16 }
 0x103   : > { %v433_v26 = vadd.f32 %v1053_v39, %v432_v25  ;;  %v456_v28 = vmax.f32 %v430_v21, 0.0 }
 0x104   : > { %v459_v27 = vmax.f32 %v441_v24, 0.0 }
 0x105   : > { %v457_v29 = vmax.f32 %v433_v26, 0.0 }
 0x106   : > { %v467_v30 = vpack.c.bf16 %v459_v27, %v458_v23  ;;  %v1072_v27 = vld [vmem:[%s1573_s6] ss:$0 sm:$0xff] }
 0x107   : > { %v466_v31 = vpack.c.bf16 %v457_v29, %v456_v28 }
 0x109   : > { %1170 = vmatprep.mubr.bf16.mxu1 %v466_v31 }
 0x10a   : > { %1171 = vmatmul.mubr.bf16.gmra.mrb[12].mxu1 %v467_v30 }
 0x1c5   : > { %v1160_v35 = vpop.f32.mrb[0].mxu1 }
 0x1c6   : > { %v582_v36 = vadd.f32 %v1160_v35, %v1063_v34  ;;  %v573_v37 = vpop.f32.mrb[1].mxu1 }
 0x1c7   : > { %v574_v38 = vadd.f32 %v1063_v34, %v573_v37  ;;  %v1161_v39 = vpop.f32.mrb[2].mxu1 }
 0x1c8   : > { %v585_v40 = vadd.f32 %v1161_v39, %v1063_v34  ;;  %v576_v41 = vpop.f32.mrb[3].mxu1  ;;  %v638_v43 = vmax.f32 %v582_v36, 0.0 }
 0x1c9   : > { %v577_v42 = vadd.f32 %v1063_v34, %v576_v41  ;;  %v636_v45 = vmax.f32 %v574_v38, 0.0 }
 0x1ca   : > { %v639_v44 = vmax.f32 %v585_v40, 0.0 }
 0x1cb   : > { %v637_v46 = vmax.f32 %v577_v42, 0.0 }
 0x1cc   : > { %v653_v47 = vpack.c.bf16 %v639_v44, %v638_v43 }
 0x1cd   : > { %v652_v48 = vpack.c.bf16 %v637_v46, %v636_v45  ;;  %v1164_v49 = vpop.f32.mrb[4].mxu1 }
 0x1ce   : > { %v598_v50 = vadd.f32 %v1164_v49, %v1063_v34  ;;  %v589_v51 = vpop.f32.mrb[5].mxu1 }
 0x1cf   : > { %v590_v52 = vadd.f32 %v1063_v34, %v589_v51  ;;  %v1165_v53 = vpop.f32.mrb[6].mxu1  ;;  %1190 = vmatprep.mubr.bf16.mxu0 %v652_v48 }
 0x1d0   : > { %v601_v54 = vadd.f32 %v1165_v53, %v1063_v34  ;;  %v592_v55 = vpop.f32.mrb[7].mxu1  ;;  %1191 = vmatmul.mubr.bf16.vlgmr.msra.gmra.mrb[16].mxu0 %v653_v47  ;;  %v642_v57 = vmax.f32 %v598_v50, 0.0 }
 0x1d1   : > { %v593_v56 = vadd.f32 %v1063_v34, %v592_v55  ;;  %v640_v59 = vmax.f32 %v590_v52, 0.0 }
 0x1d2   : > { %v643_v58 = vmax.f32 %v601_v54, 0.0 }
 0x1d3   : > { %v641_v60 = vmax.f32 %v593_v56, 0.0 }
 0x1d4   : > { %v655_v61 = vpack.c.bf16 %v643_v58, %v642_v57 }
 0x1d5   : > { %v654_v62 = vpack.c.bf16 %v641_v60, %v640_v59  ;;  %v1168_v63 = vpop.f32.mrb[8].mxu1 }
 0x1d6   : > { %v614_v0 = vadd.f32 %v1168_v63, %v1063_v34  ;;  %v605_v1 = vpop.f32.mrb[9].mxu1 }
 0x1d7   : > { %v606_v2 = vadd.f32 %v1063_v34, %v605_v1  ;;  %v1169_v3 = vpop.f32.mrb[10].mxu1  ;;  %1194 = vmatprep.mubr.bf16.mxu0 %v654_v62 }
 0x1d8   : > { %v617_v4 = vadd.f32 %v1169_v3, %v1063_v34  ;;  %v608_v5 = vpop.f32.mrb[11].mxu1  ;;  %1195 = vmatmul.mubr.bf16.gmra.mrb[20].mxu0 %v655_v61  ;;  %v646_v7 = vmax.f32 %v614_v0, 0.0 }
 0x1d9   : > { %v609_v6 = vadd.f32 %v1063_v34, %v608_v5  ;;  %v644_v9 = vmax.f32 %v606_v2, 0.0 }
 0x1da   : > { %v647_v8 = vmax.f32 %v617_v4, 0.0 }
 0x1db   : > { %v645_v10 = vmax.f32 %v609_v6, 0.0 }
 0x1dc   : > { %v657_v11 = vpack.c.bf16 %v647_v8, %v646_v7 }
 0x1dd   : > { %v656_v12 = vpack.c.bf16 %v645_v10, %v644_v9  ;;  %v1172_v13 = vpop.f32.mrb[12].mxu1 }
 0x1de   : > { %v630_v14 = vadd.f32 %v1172_v13, %v1063_v34  ;;  %v621_v15 = vpop.f32.mrb[13].mxu1 }
 0x1df   : > { %v622_v16 = vadd.f32 %v1063_v34, %v621_v15  ;;  %v1173_v17 = vpop.f32.mrb[14].mxu1  ;;  %1198 = vmatprep.mubr.bf16.mxu0 %v656_v12 }
 0x1e0   : > { %v633_v18 = vadd.f32 %v1173_v17, %v1063_v34  ;;  %v624_v19 = vpop.f32.mrb[15].mxu1  ;;  %1199 = vmatmul.mubr.bf16.gmra.mrb[24].mxu0 %v657_v11  ;;  %v650_v21 = vmax.f32 %v630_v14, 0.0 }
 0x1e1   : > { %v625_v20 = vadd.f32 %v1063_v34, %v624_v19  ;;  %v648_v23 = vmax.f32 %v622_v16, 0.0 }
 0x1e2   : > { %v651_v22 = vmax.f32 %v633_v18, 0.0 }
 0x1e3   : > { %v649_v24 = vmax.f32 %v625_v20, 0.0 }
 0x1e4   : > { %v659_v25 = vpack.c.bf16 %v651_v22, %v650_v21 }
 0x1e5   : > { %v658_v26 = vpack.c.bf16 %v649_v24, %v648_v23 }
 0x1e7   : > { %1202 = vmatprep.mubr.bf16.mxu0 %v658_v26 }
 0x1e8   : > { %1203 = vmatmul.mubr.bf16.gmra.mrb[28].mxu0 %v659_v25 }
 0x2a3   : > { %v1192_v28 = vpop.f32.mrb[16].mxu0 }
 0x2a4   : > { %v774_v29 = vadd.f32 %v1192_v28, %v1072_v27  ;;  %v765_v30 = vpop.f32.mrb[17].mxu0 }
 0x2a5   : > { %v766_v31 = vadd.f32 %v1072_v27, %v765_v30  ;;  %v1193_v32 = vpop.f32.mrb[18].mxu0 }
 0x2a6   : > { %832 = vmax.xlane.f32.xlu1 %v774_v29  ;;  %v768_v33 = vpop.f32.mrb[19].mxu0  ;;  %v777_v34 = vadd.f32 %v1193_v32, %v1072_v27 }
 0x2a7   : > { %828 = vmax.xlane.f32.xlu0 %v766_v31  ;;  %v769_v35 = vadd.f32 %v1072_v27, %v768_v33 }
 0x2aa   : > { %834 = vmax.xlane.f32.xlu1 %v777_v34 }
 0x2ab   : > { %v1196_v36 = vpop.f32.mrb[20].mxu0  ;;  %830 = vmax.xlane.f32.xlu0 %v769_v35 }
 0x2ac   : > { %v790_v37 = vadd.f32 %v1196_v36, %v1072_v27  ;;  %v781_v38 = vpop.f32.mrb[21].mxu0 }
 0x2ad   : > { %v1197_v39 = vpop.f32.mrb[22].mxu0  ;;  %v782_v42 = vadd.f32 %v1072_v27, %v781_v38 }
 0x2ae   : > { %v793_v40 = vadd.f32 %v1197_v39, %v1072_v27  ;;  %v784_v41 = vpop.f32.mrb[23].mxu0 }
 0x2af   : > { %840 = vmax.xlane.f32.xlu0 %v790_v37  ;;  %v785_v43 = vadd.f32 %v1072_v27, %v784_v41 }
 0x2b0   : > { %842 = vmax.xlane.f32.xlu1 %v793_v40 }
 0x2b3   : > { %v1200_v44 = vpop.f32.mrb[24].mxu0  ;;  %836 = vmax.xlane.f32.xlu0 %v782_v42 }
 0x2b4   : > { %v1445_v45 = vadd.f32 %v1200_v44, %v1072_v27  ;;  %v797_v46 = vpop.f32.mrb[25].mxu0  ;;  %838 = vmax.xlane.f32.xlu1 %v785_v43 }
 0x2b5   : > { %v1201_v47 = vpop.f32.mrb[26].mxu0  ;;  %v1451_v50 = vadd.f32 %v1072_v27, %v797_v46 }
 0x2b6   : > { %v1447_v48 = vadd.f32 %v1201_v47, %v1072_v27  ;;  %v800_v49 = vpop.f32.mrb[27].mxu0 }
 0x2b7   : > { %848 = vmax.xlane.f32.xlu0 %v1445_v45  ;;  %v1453_v51 = vadd.f32 %v1072_v27, %v800_v49 }
 0x2b8   : > { %850 = vmax.xlane.f32.xlu1 %v1447_v48 }
 0x2bb   : > { %v1204_v52 = vpop.f32.mrb[28].mxu0  ;;  %844 = vmax.xlane.f32.xlu0 %v1451_v50 }
 0x2bc   : > { %v813_v53 = vpop.f32.mrb[29].mxu0  ;;  %846 = vmax.xlane.f32.xlu1 %v1453_v51  ;;  %v1462_v58 = vadd.f32 %v1204_v52, %v1072_v27 }
 0x2bd   : > { %v1457_v54 = vadd.f32 %v1072_v27, %v813_v53  ;;  %v1205_v55 = vpop.f32.mrb[30].mxu0 }
 0x2be   : > { %v816_v56 = vpop.f32.mrb[31].mxu0  ;;  %v1465_v59 = vadd.f32 %v1205_v55, %v1072_v27 }
 0x2bf   : > { %v1459_v57 = vadd.f32 %v1072_v27, %v816_v56  ;;  %852 = vmax.xlane.f32.xlu0 %v1457_v54 }
 0x2c1   : > { %854 = vmax.xlane.f32.xlu1 %v1459_v57 }
 0x2c3   : > { %856 = vmax.xlane.f32.xlu0 %v1462_v58 }
 0x2c5   : > { %858 = vmax.xlane.f32.xlu1 %v1465_v59 }
 0x333   : > { %v833_v60 = vpop.xlane.xlu1 %832 }
 0x334   : > { %v862_v61 = vsub.f32 %v774_v29, %v833_v60  ;;  %v829_v62 = vpop.xlane.xlu0 %828 }
 0x335   : > { %v860_v63 = vsub.f32 %v766_v31, %v829_v62 }
 0x336   : > { %v880_v0 = vmul.f32 1.442695, %v862_v61 }
 0x337   : > { %v876_v1 = vmul.f32 1.442695, %v860_v63  ;;  %v835_v2 = vpop.xlane.xlu1 %834 }
 0x338   : > { %1231 = vpow2.f32 %v880_v0  ;;  %v863_v3 = vsub.f32 %v777_v34, %v835_v2  ;;  %v831_v4 = vpop.xlane.xlu0 %830 }
 0x339   : > { %v861_v5 = vsub.f32 %v769_v35, %v831_v4  ;;  %1233 = vpow2.f32 %v876_v1 }
 0x33a   : > { %v882_v6 = vmul.f32 1.442695, %v863_v3 }
 0x33b   : > { %v878_v7 = vmul.f32 1.442695, %v861_v5 }
 0x33c   : > { %1235 = vpow2.f32 %v882_v6  ;;  %v841_v8 = vpop.xlane.xlu0 %840 }
 0x33d   : > { %v866_v9 = vsub.f32 %v790_v37, %v841_v8  ;;  %v843_v10 = vpop.xlane.xlu1 %842  ;;  %1237 = vpow2.f32 %v878_v7 }
 0x33e   : > { %v867_v11 = vsub.f32 %v793_v40, %v843_v10 }
 0x33f   : > { %v888_v12 = vmul.f32 1.442695, %v866_v9 }
 0x340   : > { %v890_v13 = vmul.f32 1.442695, %v867_v11  ;;  %v837_v14 = vpop.xlane.xlu0 %836 }
 0x341   : > { %1239 = vpow2.f32 %v888_v12  ;;  %v864_v15 = vsub.f32 %v782_v42, %v837_v14  ;;  %v839_v16 = vpop.xlane.xlu1 %838 }
 0x342   : > { %v1469_v17 = vpop.eup %1231  ;;  %v865_v18 = vsub.f32 %v785_v43, %v839_v16  ;;  %1241 = vpow2.f32 %v890_v13 }
 0x343   : > { %v884_v19 = vmul.f32 1.442695, %v864_v15  ;;  %912 = vadd.xlane.f32.xlu0 %v1469_v17  ;;  %v1472_v22 = vpop.eup %1233 }
 0x344   : > { %v886_v20 = vmul.f32 1.442695, %v865_v18  ;;  %v849_v21 = vpop.xlane.xlu0 %848 }
 0x345   : > { %1243 = vpow2.f32 %v884_v19  ;;  %v870_v23 = vsub.f32 %v1445_v45, %v849_v21  ;;  %v851_v24 = vpop.xlane.xlu1 %850 }
 0x346   : > { %v1475_v25 = vpop.eup %1235  ;;  %v871_v26 = vsub.f32 %v1447_v48, %v851_v24  ;;  %1245 = vpow2.f32 %v886_v20 }
 0x347   : > { %v896_v27 = vmul.f32 1.442695, %v870_v23  ;;  %914 = vadd.xlane.f32.xlu1 %v1475_v25  ;;  %908 = vadd.xlane.f32.xlu0 %v1472_v22  ;;  %v1481_v32 = vpop.eup %1237 }
 0x348   : > { %v898_v28 = vmul.f32 1.442695, %v871_v26  ;;  %v845_v29 = vpop.xlane.xlu0 %844 }
 0x349   : > { %1247 = vpow2.f32 %v896_v27  ;;  %v868_v30 = vsub.f32 %v1451_v50, %v845_v29  ;;  %v847_v31 = vpop.xlane.xlu1 %846 }
 0x34a   : > { %v869_v33 = vsub.f32 %v1453_v51, %v847_v31  ;;  %1249 = vpow2.f32 %v898_v28 }
 0x34b   : > { %v1484_v34 = vpop.eup %1239  ;;  %v892_v35 = vmul.f32 1.442695, %v868_v30  ;;  %910 = vadd.xlane.f32.xlu1 %v1481_v32 }
 0x34c   : > { %v894_v36 = vmul.f32 1.442695, %v869_v33  ;;  %920 = vadd.xlane.f32.xlu0 %v1484_v34  ;;  %v853_v37 = vpop.xlane.xlu0 %852  ;;  %v1489_v39 = vpop.eup %1241 }
 0x34d   : > { %1251 = vpow2.f32 %v892_v35  ;;  %v872_v38 = vsub.f32 %v1457_v54, %v853_v37 }
 0x34e   : > { %v855_v40 = vpop.xlane.xlu1 %854  ;;  %1253 = vpow2.f32 %v894_v36 }
 0x34f   : > { %v1491_v41 = vpop.eup %1243  ;;  %v900_v42 = vmul.f32 1.442695, %v872_v38  ;;  %v873_v43 = vsub.f32 %v1459_v57, %v855_v40  ;;  %922 = vadd.xlane.f32.xlu1 %v1489_v39 }
 0x350   : > { %916 = vadd.xlane.f32.xlu0 %v1491_v41  ;;  %v857_v44 = vpop.xlane.xlu0 %856  ;;  %v1497_v47 = vpop.eup %1245 }
 0x351   : > { %1255 = vpow2.f32 %v900_v42  ;;  %v902_v45 = vmul.f32 1.442695, %v873_v43  ;;  %v874_v46 = vsub.f32 %v1462_v58, %v857_v44 }
 0x352   : > { %v859_v48 = vpop.xlane.xlu1 %858 }
 0x353   : > { %v1499_v49 = vpop.eup %1247  ;;  %1257 = vpow2.f32 %v902_v45  ;;  %v904_v50 = vmul.f32 1.442695, %v874_v46  ;;  %v875_v51 = vsub.f32 %v1465_v59, %v859_v48  ;;  %918 = vadd.xlane.f32.xlu1 %v1497_v47 }
 0x354   : > { %928 = vadd.xlane.f32.xlu0 %v1499_v49  ;;  %v1504_v53 = vpop.eup %1249 }
 0x355   : > { %1259 = vpow2.f32 %v904_v50  ;;  %v906_v52 = vmul.f32 1.442695, %v875_v51 }
 0x357   : > { %v1506_v54 = vpop.eup %1251  ;;  %1261 = vpow2.f32 %v906_v52  ;;  %930 = vadd.xlane.f32.xlu1 %v1504_v53 }
 0x358   : > { %924 = vadd.xlane.f32.xlu0 %v1506_v54  ;;  %v1510_v55 = vpop.eup %1253 }
 0x35b   : > { %v1512_v56 = vpop.eup %1255  ;;  %926 = vadd.xlane.f32.xlu1 %v1510_v55 }
 0x35c   : > { %932 = vadd.xlane.f32.xlu0 %v1512_v56 }
 0x35d   : > { %v1516_v57 = vpop.eup %1257 }
 0x35f   : > { %v1518_v58 = vpop.eup %1259  ;;  %934 = vadd.xlane.f32.xlu1 %v1516_v57 }
 0x360   : > { %936 = vadd.xlane.f32.xlu0 %v1518_v58 }
 0x361   : > { %v1522_v59 = vpop.eup %1261 }
 0x363   : > { %938 = vadd.xlane.f32.xlu1 %v1522_v59 }
 0x3d0   : > { %v913_v60 = vpop.xlane.xlu0 %912 }
 0x3d1   : > { %1263 = vrcp.f32 %v913_v60 }
 0x3d4   : > { %v915_v61 = vpop.xlane.xlu1 %914  ;;  %v909_v62 = vpop.xlane.xlu0 %908 }
 0x3d5   : > { %1265 = vrcp.f32 %v915_v61 }
 0x3d6   : > { %1267 = vrcp.f32 %v909_v62 }
 0x3d8   : > { %v911_v63 = vpop.xlane.xlu1 %910 }
 0x3d9   : > { %1269 = vrcp.f32 %v911_v63  ;;  %v921_v0 = vpop.xlane.xlu0 %920 }
 0x3da   : > { %1271 = vrcp.f32 %v921_v0 }
 0x3db   : > { %v1264_v1 = vpop.eup %1263 }
 0x3dc   : > { %v945_v2 = vmul.f32 %v1264_v1, %v1469_v17  ;;  %v923_v3 = vpop.xlane.xlu1 %922 }
 0x3dd   : > { %1273 = vrcp.f32 %v923_v3  ;;  %v917_v4 = vpop.xlane.xlu0 %916 }
 0x3de   : > { %974 = vst [vmem:[%s1530_s9 + $0x10] sm:$0xff] %v945_v2  ;;  %1275 = vrcp.f32 %v917_v4 }
 0x3df   : > { %v1266_v5 = vpop.eup %1265 }
 0x3e0   : > { %v1268_v6 = vpop.eup %1267  ;;  %v947_v7 = vmul.f32 %v1266_v5, %v1475_v25  ;;  %v919_v8 = vpop.xlane.xlu1 %918 }
 0x3e1   : > { %v941_v9 = vmul.f32 %v1268_v6, %v1472_v22  ;;  %1277 = vrcp.f32 %v919_v8  ;;  %v929_v10 = vpop.xlane.xlu0 %928 }
 0x3e2   : > { %975 = vst [vmem:[%s1530_s9 + $0x18] sm:$0xff] %v947_v7  ;;  %1279 = vrcp.f32 %v929_v10 }
 0x3e3   : > { %v1270_v11 = vpop.eup %1269  ;;  %972 = vst [vmem:[%s1530_s9] sm:$0xff] %v941_v9 }
 0x3e4   : > { %v1272_v12 = vpop.eup %1271  ;;  %v943_v13 = vmul.f32 %v1270_v11, %v1481_v32  ;;  %v931_v14 = vpop.xlane.xlu1 %930 }
 0x3e5   : > { %v953_v15 = vmul.f32 %v1272_v12, %v1484_v34  ;;  %1281 = vrcp.f32 %v931_v14  ;;  %v925_v16 = vpop.xlane.xlu0 %924 }
 0x3e6   : > { %973 = vst [vmem:[%s1530_s9 + $0x8] sm:$0xff] %v943_v13  ;;  %1283 = vrcp.f32 %v925_v16 }
 0x3e7   : > { %v1274_v17 = vpop.eup %1273  ;;  %978 = vst [vmem:[%s1530_s9 + $0x30] sm:$0xff] %v953_v15 }
 0x3e8   : > { %v1276_v18 = vpop.eup %1275  ;;  %v955_v19 = vmul.f32 %v1274_v17, %v1489_v39  ;;  %v927_v20 = vpop.xlane.xlu1 %926 }
 0x3e9   : > { %v949_v21 = vmul.f32 %v1276_v18, %v1491_v41  ;;  %1285 = vrcp.f32 %v927_v20  ;;  %v933_v22 = vpop.xlane.xlu0 %932 }
 0x3ea   : > { %979 = vst [vmem:[%s1530_s9 + $0x38] sm:$0xff] %v955_v19  ;;  %1287 = vrcp.f32 %v933_v22 }
 0x3eb   : > { %v1278_v23 = vpop.eup %1277  ;;  %976 = vst [vmem:[%s1530_s9 + $0x20] sm:$0xff] %v949_v21 }
 0x3ec   : > { %v1280_v24 = vpop.eup %1279  ;;  %v951_v25 = vmul.f32 %v1278_v23, %v1497_v47  ;;  %v935_v26 = vpop.xlane.xlu1 %934 }
 0x3ed   : > { %v961_v27 = vmul.f32 %v1280_v24, %v1499_v49  ;;  %1289 = vrcp.f32 %v935_v26  ;;  %v937_v28 = vpop.xlane.xlu0 %936 }
 0x3ee   : > { %977 = vst [vmem:[%s1530_s9 + $0x28] sm:$0xff] %v951_v25  ;;  %1291 = vrcp.f32 %v937_v28 }
 0x3ef   : > { %v1282_v29 = vpop.eup %1281  ;;  %982 = vst [vmem:[%s1530_s9 + $0x50] sm:$0xff] %v961_v27 }
 0x3f0   : > { %v1284_v30 = vpop.eup %1283  ;;  %v963_v31 = vmul.f32 %v1282_v29, %v1504_v53  ;;  %v939_v32 = vpop.xlane.xlu1 %938 }
 0x3f1   : > { %v957_v33 = vmul.f32 %v1284_v30, %v1506_v54  ;;  %1293 = vrcp.f32 %v939_v32 }
 0x3f2   : > { %983 = vst [vmem:[%s1530_s9 + $0x58] sm:$0xff] %v963_v31 }
 0x3f3   : > { %v1286_v34 = vpop.eup %1285  ;;  %980 = vst [vmem:[%s1530_s9 + $0x40] sm:$0xff] %v957_v33 }
 0x3f4   : > { %v1288_v35 = vpop.eup %1287  ;;  %v959_v36 = vmul.f32 %v1286_v34, %v1510_v55 }
 0x3f5   : > { %v965_v37 = vmul.f32 %v1288_v35, %v1512_v56 }
 0x3f6   : > { %981 = vst [vmem:[%s1530_s9 + $0x48] sm:$0xff] %v959_v36 }
 0x3f7   : > { %v1290_v38 = vpop.eup %1289  ;;  %984 = vst [vmem:[%s1530_s9 + $0x60] sm:$0xff] %v965_v37 }
 0x3f8   : > { %v1292_v39 = vpop.eup %1291  ;;  %v967_v40 = vmul.f32 %v1290_v38, %v1516_v57 }
 0x3f9   : > { %v969_v41 = vmul.f32 %v1292_v39, %v1518_v58 }
 0x3fa   : > { %985 = vst [vmem:[%s1530_s9 + $0x68] sm:$0xff] %v967_v40 }
 0x3fb   : > { %v1294_v42 = vpop.eup %1293  ;;  %986 = vst [vmem:[%s1530_s9 + $0x70] sm:$0xff] %v969_v41 }
 0x3fc   : > { %v971_v43 = vmul.f32 %v1294_v42, %v1522_v59 }
 0x3fe   : > { %987 = vst [vmem:[%s1530_s9 + $0x78] sm:$0xff] %v971_v43 }
 0x3ff PF: > { %s17_s24 = sadd.s32 1, %s1301_s24  }
 0x400   : > { %p14_p4 = scmp.ge.s32.totalorder %s17_s24, 4  }
 0x402   :  { %16 = sbr.rel (!%p14_p4) target bundleno = 1 (0x1), region = 78 }

</bundles_post_ra>
